<compile_context>
chip_gen: v7x
topology: tpu7x:2x2x1
jax: 0.10.0
libtpu: 0.0.40
codegen_flags: <defaults>
</compile_context>

<pallas_src>
import jax
import jax.numpy as jnp
from jax.experimental import pallas as pl
from jax.experimental.pallas import tpu as pltpu


def _round_up(x, m):
    return (x + m - 1) // m * m


# --------------------------------------------------------------------------- #
# Kernel
# --------------------------------------------------------------------------- #
def _mlp_kernel(x_ref, w1_ref, b1_ref, w2_ref, b2_ref, w3_ref, b3_ref, o_ref):
    # x tile: bf16 [block_b, in_dim]; weights bf16; biases f32 (lane-padded).
    x = x_ref[...]

    # layer1 + ReLU  (dropout = identity in eval mode)
    h1 = jnp.dot(x, w1_ref[...], preferred_element_type=jnp.float32)
    h1 = jnp.maximum(h1 + b1_ref[...], 0.0)

    # layer2 + ReLU
    h2 = jnp.dot(h1.astype(jnp.bfloat16), w2_ref[...],
                 preferred_element_type=jnp.float32)
    h2 = jnp.maximum(h2 + b2_ref[...], 0.0)

    # layer3 — padded lanes carry a -1e30 bias baked into b3 (prepare_params),
    # so they cannot influence the row max or the LSE.  No in-kernel mask.
    logits = jnp.dot(h2.astype(jnp.bfloat16), w3_ref[...],
                     preferred_element_type=jnp.float32) + b3_ref[...]

    # LogSoftmax over dim=1 (numerically stable).
    m = jnp.max(logits, axis=1, keepdims=True)
    shifted = logits - m
    lse = jnp.log(jnp.sum(jnp.exp(shifted), axis=1, keepdims=True))
    o_ref[...] = (shifted - lse).astype(o_ref.dtype)


# --------------------------------------------------------------------------- #
# One-time parameter preparation (hoisted out of the per-call forward path)
# --------------------------------------------------------------------------- #
def prepare_params(params):
    """Pad every GEMM N dim to a lane multiple and cast weights to bf16, ONCE.

    Padded weight columns / biases are zero (ReLU(0)=0 -> exact), except the
    padded logit lanes of b3 which get -1e30 so they vanish in the log-softmax.
    """
    w1, b1, w2, b2, w3, b3 = (params["w1"], params["b1"], params["w2"],
                              params["b2"], params["w3"], params["b3"])
    in_dim, h1 = w1.shape
    h2 = w2.shape[1]
    out_dim = w3.shape[1]

    # TODO(synk): on v6e/v7x (2x256 MXU) pad to 256 when a hidden dim exceeds
    # 128; moot at these sizes and 128 is optimal for v5e's 128-wide MXU.
    h1p = _round_up(h1, 128)
    h2p = _round_up(h2, 128)
    outp = _round_up(out_dim, 128)

    bf16, f32 = jnp.bfloat16, jnp.float32
    w1p = jnp.zeros((in_dim, h1p), bf16).at[:, :h1].set(w1.astype(bf16))
    b1p = jnp.zeros((1, h1p), f32).at[:, :h1].set(b1.reshape(1, h1).astype(f32))
    w2p = jnp.zeros((h1p, h2p), bf16).at[:h1, :h2].set(w2.astype(bf16))
    b2p = jnp.zeros((1, h2p), f32).at[:, :h2].set(b2.reshape(1, h2).astype(f32))
    w3p = jnp.zeros((h2p, outp), bf16).at[:h2, :out_dim].set(w3.astype(bf16))
    b3p = jnp.full((1, outp), -1e30, f32).at[:, :out_dim].set(
        b3.reshape(1, out_dim).astype(f32))

    prepared = {"w1": w1p, "b1": b1p, "w2": w2p, "b2": b2p, "w3": w3p, "b3": b3p,
                "in_dim": in_dim, "out_dim": out_dim}
    # Materialize now so the padding ops never rerun inside the hot path.
    return jax.tree_util.tree_map(
        lambda a: jax.block_until_ready(a) if isinstance(a, jax.Array) else a,
        prepared)


def _tpu_generation_info():
    """(physical VMEM bytes, TensorCores per chip) with safe fallbacks."""
    vmem_cap = 64 * 1024 * 1024   # conservative default (v7x per-TC VMEM)
    n_tc = 1
    try:
        vmem_cap = int(pltpu.get_tpu_info().vmem_capacity_bytes)
    except Exception:
        pass
    try:
        kind = jax.devices()[0].device_kind.lower()
        if "v7" in kind:
            n_tc = 2
    except Exception:
        pass
    return vmem_cap, n_tc


# --------------------------------------------------------------------------- #
# Forward
# --------------------------------------------------------------------------- #
def my_network_forward(x, prepared, *, block_b=None):
    """x: [B, input_size] float32.  prepared: output of prepare_params()."""
    w1p, b1p = prepared["w1"], prepared["b1"]
    w2p, b2p = prepared["w2"], prepared["b2"]
    w3p, b3p = prepared["w3"], prepared["b3"]
    in_dim = prepared["in_dim"]
    out_dim = prepared["out_dim"]

    B, x_in = x.shape
    assert x_in == in_dim, "input feature dim mismatch"
    h1p, h2p, outp = w1p.shape[1], w2p.shape[1], w3p.shape[1]

    # ---- generation-aware VMEM budget ------------------------------------
    vmem_cap, n_tc = _tpu_generation_info()
    # ~3/4 of physical VMEM (=> ~48 MiB on v7x, ~96 MiB on v5e/v6e), capped.
    budget = int(min(100 * 1024 * 1024, max(16 * 1024 * 1024, (vmem_cap * 3) // 4)))

    weight_bytes = ((w1p.size + w2p.size + w3p.size) * 2
                    + (b1p.size + b2p.size + b3p.size) * 4)
    # Resident (constant-index) weights: single-buffer only once they are big
    # enough for the VMEM saving to matter; tiny weights keep default buffering.
    weight_buf = 1 if weight_bytes > (4 * 1024 * 1024) else 2

    def step_vmem_bytes(bb):
        x_tile = bb * in_dim * 2            # bf16 x tile (double-buffered)
        o_tile = bb * outp * 4              # f32 out tile (double-buffered)
        live = bb * max(h1p + h2p, h2p + outp) * 4   # peak live f32 activations
        return 2 * (x_tile + o_tile) + weight_buf * weight_bytes + live

    # ---- batch tile: one grid step per TensorCore ------------------------
    if block_b is None:
        Bp16 = _round_up(B, 16)             # bf16 sublane packing granularity
        if n_tc >= 2 and Bp16 >= 512:
            # Split across both TCs only when each per-core tile stays >= 256
            # rows (otherwise the duplicated weight DMA / step overhead loses).
            block_b = _round_up(pl.cdiv(Bp16, n_tc), 128)
        elif Bp16 >= 128:
            block_b = _round_up(Bp16, 128)  # single step, MXU-full M dimension
        else:
            block_b = Bp16                  # tiny batch: one small step
        # Shrink only if the VMEM budget forces it (128-row then 16-row steps).
        while block_b > 128 and step_vmem_bytes(block_b) > budget:
            block_b = _round_up(block_b // 2, 128)
        while block_b > 16 and step_vmem_bytes(block_b) > budget:
            block_b = _round_up(block_b // 2, 16)
    block_b = max(8, block_b)

    Bp = _round_up(B, block_b)
    xb = x.astype(jnp.bfloat16)
    if Bp != B:
        xb = jnp.zeros((Bp, in_dim), jnp.bfloat16).at[:B].set(xb)

    grid = (Bp // block_b,)

    def resident(shape):
        # Block index never changes across the grid -> block stays resident.
        if weight_buf == 1:
            return pl.BlockSpec(shape, lambda i: (0, 0),
                                pipeline_mode=pl.Buffered(1))
        return pl.BlockSpec(shape, lambda i: (0, 0))

    flops = 2 * Bp * (in_dim * h1p + h1p * h2p + h2p * outp)
    bytes_accessed = xb.size * 2 + weight_bytes + Bp * outp * 4
    cost = pl.CostEstimate(flops=int(flops),
                           transcendentals=int(Bp * outp + Bp),
                           bytes_accessed=int(bytes_accessed))

    out = pl.pallas_call(
        _mlp_kernel,
        out_shape=jax.ShapeDtypeStruct((Bp, outp), jnp.float32),
        grid_spec=pltpu.PrefetchScalarGridSpec(
            num_scalar_prefetch=0,
            grid=grid,
            in_specs=[
                pl.BlockSpec((block_b, in_dim), lambda i: (i, 0)),   # x tile
                resident((in_dim, h1p)),
                resident((1, h1p)),
                resident((h1p, h2p)),
                resident((1, h2p)),
                resident((h2p, outp)),
                resident((1, outp)),
            ],
            out_specs=pl.BlockSpec((block_b, outp), lambda i: (i, 0)),
        ),
        compiler_params=pltpu.CompilerParams(
            dimension_semantics=("parallel",),
            vmem_limit_bytes=budget,
        ),
        cost_estimate=cost,
    )(xb, w1p, b1p, w2p, b2p, w3p, b3p)

    return out[:B, :out_dim]


# --------------------------------------------------------------------------- #
# Init + reference + test
# --------------------------------------------------------------------------- #
def init_params(key, input_size, hidden_units, output_size):
    """Deterministic init mirroring nn.Linear shapes (stored as [in, out], f32)."""
    h2 = hidden_units // 2
    keys = jax.random.split(key, 6)

    def lin(kw, kb, fan_in, fan_out):
        bound = 1.0 / jnp.sqrt(fan_in)
        w = jax.random.uniform(kw, (fan_in, fan_out), jnp.float32, -bound, bound)
        b = jax.random.uniform(kb, (1, fan_out), jnp.float32, -bound, bound)
        return w, b

    w1, b1 = lin(keys[0], keys[1], input_size, hidden_units)
    w2, b2 = lin(keys[2], keys[3], hidden_units, h2)
    w3, b3 = lin(keys[4], keys[5], h2, output_size)
    return {"w1": w1, "b1": b1, "w2": w2, "b2": b2, "w3": w3, "b3": b3}


def _reference(x, p):
    """Pure-JAX reference with the same bf16 GEMM inputs / f32 accumulation."""
    bf16 = jnp.bfloat16
    h = jnp.maximum(jnp.dot(x.astype(bf16), p["w1"].astype(bf16),
                            preferred_element_type=jnp.float32) + p["b1"], 0.0)
    h = jnp.maximum(jnp.dot(h.astype(bf16), p["w2"].astype(bf16),
                            preferred_element_type=jnp.float32) + p["b2"], 0.0)
    logits = jnp.dot(h.astype(bf16), p["w3"].astype(bf16),
                     preferred_element_type=jnp.float32) + p["b3"]
    return jax.nn.log_softmax(logits, axis=1)


if __name__ == "__main__":
    # Shapes consistent with the module: input=32, hidden=32 (-> 16), out=10.
    input_size, hidden_units, drop_rate, output_size = 32, 32, 0.2, 10
    batch = 128

    key = jax.random.PRNGKey(0)
    kx, kp = jax.random.split(key)
    x = jax.random.normal(kx, (batch, input_size), jnp.float32)
    params = init_params(kp, input_size, hidden_units, output_size)

    prepared = prepare_params(params)          # one-time padding / bf16 cast
    out = jax.block_until_ready(my_network_forward(x, prepared))

    ref = _reference(x, params)
    assert out.shape == (batch, output_size)
    assert jnp.allclose(out, ref, atol=2e-3, rtol=2e-3), "mismatch vs reference"
    assert bool(jnp.all(jnp.isfinite(out))), "non-finite values in output"

    print("KERNEL_OK")
</pallas_src>

<mosaic_0001>
module attributes {stable_mosaic.version = 11 : i64} {
  func.func @_mlp_kernel(%arg0: i32, %arg1: memref<128x32xbf16, #tpu.memory_space<vmem>>, %arg2: memref<32x128xbf16, #tpu.memory_space<vmem>>, %arg3: memref<1x128xf32, #tpu.memory_space<vmem>>, %arg4: memref<128x128xbf16, #tpu.memory_space<vmem>>, %arg5: memref<1x128xf32, #tpu.memory_space<vmem>>, %arg6: memref<128x128xbf16, #tpu.memory_space<vmem>>, %arg7: memref<1x128xf32, #tpu.memory_space<vmem>>, %arg8: memref<128x128xf32, #tpu.memory_space<vmem>>) attributes {dimension_semantics = [#tpu.dimension_semantics<parallel>], iteration_bounds = array<i64: 1>, scalar_prefetch = 0 : i64, scratch_operands = 0 : i64, tpu.core_type = #tpu.core_type<tc>, window_params = [{transform_indices = @transform_0, window_bounds = array<i64: 128, 32>}, {pipeline_mode = #tpu.pipeline_mode<synchronous>, transform_indices = @transform_1, window_bounds = array<i64: 32, 128>}, {pipeline_mode = #tpu.pipeline_mode<synchronous>, transform_indices = @transform_2, window_bounds = array<i64: 1, 128>}, {pipeline_mode = #tpu.pipeline_mode<synchronous>, transform_indices = @transform_3, window_bounds = array<i64: 128, 128>}, {pipeline_mode = #tpu.pipeline_mode<synchronous>, transform_indices = @transform_4, window_bounds = array<i64: 1, 128>}, {pipeline_mode = #tpu.pipeline_mode<synchronous>, transform_indices = @transform_5, window_bounds = array<i64: 128, 128>}, {pipeline_mode = #tpu.pipeline_mode<synchronous>, transform_indices = @transform_6, window_bounds = array<i64: 1, 128>}, {transform_indices = @transform_7, window_bounds = array<i64: 128, 128>}]} {
    %c0 = arith.constant 0 : index
    %c0_0 = arith.constant 0 : index
    %0 = vector.load %arg1[%c0, %c0_0] : memref<128x32xbf16, #tpu.memory_space<vmem>>, vector<128x32xbf16>
    %c0_1 = arith.constant 0 : index
    %c0_2 = arith.constant 0 : index
    %1 = vector.load %arg2[%c0_1, %c0_2] : memref<32x128xbf16, #tpu.memory_space<vmem>>, vector<32x128xbf16>
    %cst = arith.constant dense<0.000000e+00> : vector<128x128xf32>
    %2 = tpu.matmul %0, %1, %cst {dimension_numbers = #tpu.dot_dimension_numbers<[1], [0], [0], [1], [0, 0, 1, 1], [], []>} : vector<128x32xbf16>, vector<32x128xbf16>, vector<128x128xf32> -> vector<128x128xf32>
    %c0_3 = arith.constant 0 : index
    %c0_4 = arith.constant 0 : index
    %3 = vector.load %arg3[%c0_3, %c0_4] : memref<1x128xf32, #tpu.memory_space<vmem>>, vector<1x128xf32>
    %4 = vector.broadcast %3 : vector<1x128xf32> to vector<128x128xf32>
    %5 = arith.addf %2, %4 : vector<128x128xf32>
    %cst_5 = arith.constant 0.000000e+00 : f32
    %6 = vector.broadcast %cst_5 : f32 to vector<128x128xf32>
    %7 = arith.maximumf %5, %6 : vector<128x128xf32>
    %8 = arith.truncf %7 : vector<128x128xf32> to vector<128x128xbf16>
    %c0_6 = arith.constant 0 : index
    %c0_7 = arith.constant 0 : index
    %9 = vector.load %arg4[%c0_6, %c0_7] : memref<128x128xbf16, #tpu.memory_space<vmem>>, vector<128x128xbf16>
    %cst_8 = arith.constant dense<0.000000e+00> : vector<128x128xf32>
    %10 = tpu.matmul %8, %9, %cst_8 {dimension_numbers = #tpu.dot_dimension_numbers<[1], [0], [0], [1], [0, 0, 1, 1], [], []>} : vector<128x128xbf16>, vector<128x128xbf16>, vector<128x128xf32> -> vector<128x128xf32>
    %c0_9 = arith.constant 0 : index
    %c0_10 = arith.constant 0 : index
    %11 = vector.load %arg5[%c0_9, %c0_10] : memref<1x128xf32, #tpu.memory_space<vmem>>, vector<1x128xf32>
    %12 = vector.broadcast %11 : vector<1x128xf32> to vector<128x128xf32>
    %13 = arith.addf %10, %12 : vector<128x128xf32>
    %cst_11 = arith.constant 0.000000e+00 : f32
    %14 = vector.broadcast %cst_11 : f32 to vector<128x128xf32>
    %15 = arith.maximumf %13, %14 : vector<128x128xf32>
    %16 = arith.truncf %15 : vector<128x128xf32> to vector<128x128xbf16>
    %c0_12 = arith.constant 0 : index
    %c0_13 = arith.constant 0 : index
    %17 = vector.load %arg6[%c0_12, %c0_13] : memref<128x128xbf16, #tpu.memory_space<vmem>>, vector<128x128xbf16>
    %cst_14 = arith.constant dense<0.000000e+00> : vector<128x128xf32>
    %18 = tpu.matmul %16, %17, %cst_14 {dimension_numbers = #tpu.dot_dimension_numbers<[1], [0], [0], [1], [0, 0, 1, 1], [], []>} : vector<128x128xbf16>, vector<128x128xbf16>, vector<128x128xf32> -> vector<128x128xf32>
    %c0_15 = arith.constant 0 : index
    %c0_16 = arith.constant 0 : index
    %19 = vector.load %arg7[%c0_15, %c0_16] : memref<1x128xf32, #tpu.memory_space<vmem>>, vector<1x128xf32>
    %20 = vector.broadcast %19 : vector<1x128xf32> to vector<128x128xf32>
    %21 = arith.addf %18, %20 : vector<128x128xf32>
    %cst_17 = arith.constant dense<0xFF800000> : vector<128xf32>
    %22 = vector.multi_reduction <maximumf>, %21, %cst_17 [1] : vector<128x128xf32> to vector<128xf32>
    %23 = vector.shape_cast %22 : vector<128xf32> to vector<128x1xf32>
    %24 = vector.broadcast %23 : vector<128x1xf32> to vector<128x128xf32>
    %25 = arith.subf %21, %24 : vector<128x128xf32>
    %26 = math.exp %25 : vector<128x128xf32>
    %cst_18 = arith.constant dense<0.000000e+00> : vector<128xf32>
    %27 = vector.multi_reduction <add>, %26, %cst_18 [1] : vector<128x128xf32> to vector<128xf32>
    %28 = vector.shape_cast %27 : vector<128xf32> to vector<128x1xf32>
    %29 = math.log %28 : vector<128x1xf32>
    %30 = vector.broadcast %29 : vector<128x1xf32> to vector<128x128xf32>
    %31 = arith.subf %25, %30 : vector<128x128xf32>
    %c0_19 = arith.constant 0 : index
    %c0_20 = arith.constant 0 : index
    %32 = vector.load %arg8[%c0_19, %c0_20] : memref<128x128xf32, #tpu.memory_space<vmem>>, vector<128x128xf32>
    tpu.vector_store %arg8[%c0_19, %c0_20], %31 {strides = array<i32>} : memref<128x128xf32, #tpu.memory_space<vmem>>, vector<128x128xf32>,
    return
  }
  func.func @transform_0(%arg0: i32) -> (i32, i32) {
    %c0_i32 = arith.constant 0 : i32
    %c0_i32_0 = arith.constant 0 : i32
    return %arg0, %c0_i32 : i32, i32
  }
  func.func @transform_1(%arg0: i32) -> (i32, i32) {
    %c0_i32 = arith.constant 0 : i32
    %c0_i32_0 = arith.constant 0 : i32
    %c0_i32_1 = arith.constant 0 : i32
    return %c0_i32, %c0_i32_0 : i32, i32
  }
  func.func @transform_2(%arg0: i32) -> (i32, i32) {
    %c0_i32 = arith.constant 0 : i32
    %c0_i32_0 = arith.constant 0 : i32
    %c0_i32_1 = arith.constant 0 : i32
    return %c0_i32, %c0_i32_0 : i32, i32
  }
  func.func @transform_3(%arg0: i32) -> (i32, i32) {
    %c0_i32 = arith.constant 0 : i32
    %c0_i32_0 = arith.constant 0 : i32
    %c0_i32_1 = arith.constant 0 : i32
    return %c0_i32, %c0_i32_0 : i32, i32
  }
  func.func @transform_4(%arg0: i32) -> (i32, i32) {
    %c0_i32 = arith.constant 0 : i32
    %c0_i32_0 = arith.constant 0 : i32
    %c0_i32_1 = arith.constant 0 : i32
    return %c0_i32, %c0_i32_0 : i32, i32
  }
  func.func @transform_5(%arg0: i32) -> (i32, i32) {
    %c0_i32 = arith.constant 0 : i32
    %c0_i32_0 = arith.constant 0 : i32
    %c0_i32_1 = arith.constant 0 : i32
    return %c0_i32, %c0_i32_0 : i32, i32
  }
  func.func @transform_6(%arg0: i32) -> (i32, i32) {
    %c0_i32 = arith.constant 0 : i32
    %c0_i32_0 = arith.constant 0 : i32
    %c0_i32_1 = arith.constant 0 : i32
    return %c0_i32, %c0_i32_0 : i32, i32
  }
  func.func @transform_7(%arg0: i32) -> (i32, i32) {
    %c0_i32 = arith.constant 0 : i32
    %c0_i32_0 = arith.constant 0 : i32
    return %arg0, %c0_i32 : i32, i32
  }
}

</mosaic_0001>

<bundles_post_ra>
// kernel: tpu_custom_call.1
= control target key start
LH: loop header
LB: loop body
LE: loop exit
PB: predicated region body
PF: predicated region fallthrough
CT: control target
= control target key end

     0   :  { %12 = vsyncpa [#allocation3], 0  ;;  %s1352_s0 = inlined_call_operand.vmem [shape: bf16[128,32], index: 0, kind: input, shape index: {}]   ;;  %s1353_s1 = inlined_call_operand.vmem [shape: bf16[32,128], index: 1, kind: input, shape index: {}]   ;;  %s1354_s2 = inlined_call_operand.vmem [shape: f32[1,128], index: 2, kind: input, shape index: {}]   ;;  %s1355_s3 = inlined_call_operand.vmem [shape: bf16[128,128], index: 3, kind: input, shape index: {}]   ;;  %s1356_s4 = inlined_call_operand.vmem [shape: f32[1,128], index: 4, kind: input, shape index: {}]   ;;  %s1357_s5 = inlined_call_operand.hbm [shape: bf16[128,128], index: 5, kind: input, shape index: {}]   ;;  %s1358_s6 = inlined_call_operand.vmem [shape: f32[1,128], index: 6, kind: input, shape index: {}]   ;;  %s1359_s7 = inlined_call_operand.hbm [shape: f32[128,128], index: 7, kind: output, shape index: {}]  }
   0x1   :  { %13 = vsyncpa [#allocation4], 0  ;;  %s1127_s24 = smov [#allocation2]   ;;  %s1079_s28 = scalar_lea.hbm %s1357_s5, 1024 }
   0x2   :  { %s29_s25 = sshll.u32 %s1127_s24, 4  ;;  %p1080_p0 = scmp.ne.s32.totalorder %s1357_s5, %s1079_s28  ;;  %s30_s25 = int_to_ptr.vmem [resolvable:$true] %s29_s25 }
   0x3   :  { %p1083_p1 = scmp.lt.u32.totalorder %s1079_s28, %s1357_s5 }
   0x5   :  { %p1085_p2 = pnand %p1083_p1, %p1080_p0 }
   0x7   :  { %1088 = shalt.err (!%p1085_p2)
}
   0x8   :  { %s1089_s10 = scalar_lea.vmem %s30_s25, 1024  ;;  %p1094_p4 = scmp.lt.s32.totalorder %s30_s25, %s30_s25 }
   0x9   :  { %p1090_p3 = scmp.ne.s32.totalorder %s30_s25, %s1089_s10  ;;  %p1095_p5 = scmp.lt.s32.totalorder %s1089_s10, %s1089_s10 }
   0xb   :  { %p1096_p6 = por %p1095_p5, %p1094_p4 }
   0xd   :  { %p1097_p7 = pnand %p1096_p6, %p1090_p3 }
   0xf   :  { %1100 = shalt.err (!%p1097_p7)
}
  0x10   :  { %s1128_s11 = smov 64   ;;  %s1129_s12 = smov 4  }
  0x11   :  { %35 = dma.hbm_to_vmem [thread:$0]  %s1357_s5, 1024, %s30_s25, [#allocation3], %s1128_s11, %s1128_s11, %s1129_s12  }
  0x12   :  { %1123 = dma.done.wait [#allocation3], 1024  }
  0x13   :  { %1124 = vsyncadd [#allocation3], 4294966272  ;;  %v989_v0 = vld [vmem:[%s1353_s1] sm:$0xff]   ;;  %v990_v1 = vld [vmem:[%s1353_s1 + $0x8] sm:$0xff]   ;;  %vm121_vm0 = vcmask 261120  }
  0x14   :  { %899 = vmatprep.subr.bf16.mxu0 %v989_v0  ;;  %v991_v2 = vld [vmem:[%s1352_s0] sm:$0xff]   ;;  %v992_v3 = vld [vmem:[%s1352_s0 + $0x8] sm:$0xff]   ;;  %v993_v4 = vld [vmem:[%s1352_s0 + $0x10] sm:$0xff]  }
  0x15   :  { %900 = vmatpush3.bf16.msra.mxu0 %v989_v0  ;;  %903 = vmatprep.mubr.msk.bf16.mxu0 %vm121_vm0, %v991_v2  ;;  %v999_v5 = vld [vmem:[%s1355_s3] sm:$0xff]   ;;  %v1000_v6 = vld [vmem:[%s1355_s3 + $0x8] sm:$0xff]   ;;  %v994_v7 = vld [vmem:[%s1352_s0 + $0x18] sm:$0xff]  }
  0x16   :  { %901 = vmatprep.subr.bf16.mxu0 %v990_v1  ;;  %919 = vmatprep.subr.bf16.mxu1 %v999_v5  ;;  %v1001_v8 = vld [vmem:[%s1355_s3 + $0x10] sm:$0xff]   ;;  %v995_v9 = vld [vmem:[%s1352_s0 + $0x20] sm:$0xff]   ;;  %v1002_v10 = vld [vmem:[%s1355_s3 + $0x18] sm:$0xff]  }
  0x17   :  { %920 = vmatpush3.bf16.msra.mxu1 %v999_v5  ;;  %v996_v11 = vld [vmem:[%s1352_s0 + $0x28] sm:$0xff]   ;;  %v1003_v12 = vld [vmem:[%s1355_s3 + $0x20] sm:$0xff]   ;;  %v997_v13 = vld [vmem:[%s1352_s0 + $0x30] sm:$0xff]  }
  0x18   :  { %921 = vmatprep.subr.bf16.mxu1 %v1000_v6  ;;  %v1004_v14 = vld [vmem:[%s1355_s3 + $0x28] sm:$0xff]   ;;  %v998_v15 = vld [vmem:[%s1352_s0 + $0x38] sm:$0xff]   ;;  %v1005_v16 = vld [vmem:[%s1355_s3 + $0x30] sm:$0xff]  }
  0x19   :  { %902 = vmatpush3.bf16.msra.mxu0 %v990_v1  ;;  %v1006_v17 = vld [vmem:[%s1355_s3 + $0x38] sm:$0xff]   ;;  %v1007_v18 = vld [vmem:[#allocation2] sm:$0xff]   ;;  %v1008_v19 = vld [vmem:[#allocation2 + $0x8] sm:$0xff]  }
  0x1a   :  { %951 = vmatprep.subr.bf16.mxu0 %v1007_v18  ;;  %v1009_v20 = vld [vmem:[#allocation2 + $0x10] sm:$0xff]   ;;  %v1010_v21 = vld [vmem:[#allocation2 + $0x18] sm:$0xff]   ;;  %v1011_v22 = vld [vmem:[#allocation2 + $0x20] sm:$0xff]  }
  0x1b   :  { %922 = vmatpush3.bf16.msra.mxu1 %v1000_v6  ;;  %v1012_v23 = vld [vmem:[#allocation2 + $0x28] sm:$0xff]   ;;  %v820_v24 = vld [vmem:[%s1354_s2] ss:$0 sm:$0xff] }
  0x1c   :  { %904 = vmatmul.mubr.msk.bf16.vlgmr.msra.gmra.mrb[0].mxu0 %vm121_vm0, %v992_v3  ;;  %923 = vmatprep.subr.bf16.mxu1 %v1001_v8 }
  0x1d   :  { %907 = vmatprep.mubr.msk.bf16.mxu0 %vm121_vm0, %v993_v4  ;;  %952 = vmatpush3.bf16.msra.mxu0 %v1007_v18  ;;  %v1014_v18 = vld [vmem:[#allocation2 + $0x38] sm:$0xff]  }
  0x1e   :  { %953 = vmatprep.subr.bf16.mxu0 %v1008_v19 }
  0x1f   :  { %924 = vmatpush3.bf16.msra.mxu1 %v1001_v8 }
  0x20   :  { %925 = vmatprep.subr.bf16.mxu1 %v1002_v10 }
  0x21   :  { %954 = vmatpush3.bf16.msra.mxu0 %v1008_v19  ;;  %v839_v19 = vld [vmem:[%s1356_s4] ss:$0 sm:$0xff] }
  0x22   :  { %955 = vmatprep.subr.bf16.mxu0 %v1009_v20 }
  0x23   :  { %926 = vmatpush3.bf16.msra.mxu1 %v1002_v10 }
  0x24   :  { %908 = vmatmul.mubr.msk.bf16.gmra.mrb[4].mxu0 %vm121_vm0, %v994_v7  ;;  %927 = vmatprep.subr.bf16.mxu1 %v1003_v12 }
  0x25   :  { %911 = vmatprep.mubr.msk.bf16.mxu0 %vm121_vm0, %v995_v9  ;;  %956 = vmatpush3.bf16.msra.mxu0 %v1009_v20 }
  0x26   :  { %957 = vmatprep.subr.bf16.mxu0 %v1010_v21 }
  0x27   :  { %928 = vmatpush3.bf16.msra.mxu1 %v1003_v12 }
  0x28   :  { %929 = vmatprep.subr.bf16.mxu1 %v1004_v14 }
  0x29   :  { %958 = vmatpush3.bf16.msra.mxu0 %v1010_v21 }
  0x2a   :  { %959 = vmatprep.subr.bf16.mxu0 %v1011_v22 }
  0x2b   :  { %930 = vmatpush3.bf16.msra.mxu1 %v1004_v14 }
  0x2c   :  { %912 = vmatmul.mubr.msk.bf16.gmra.mrb[8].mxu0 %vm121_vm0, %v996_v11  ;;  %931 = vmatprep.subr.bf16.mxu1 %v1005_v16 }
  0x2d   :  { %915 = vmatprep.mubr.msk.bf16.mxu0 %vm121_vm0, %v997_v13  ;;  %960 = vmatpush3.bf16.msra.mxu0 %v1011_v22 }
  0x2e   :  { %961 = vmatprep.subr.bf16.mxu0 %v1012_v23 }
  0x2f   :  { %932 = vmatpush3.bf16.msra.mxu1 %v1005_v16 }
  0x30   :  { %933 = vmatprep.subr.bf16.mxu1 %v1006_v17 }
  0x31   :  { %962 = vmatpush3.bf16.msra.mxu0 %v1012_v23 }
  0x33   :  { %934 = vmatpush3.bf16.msra.mxu1 %v1006_v17  ;;  %v1013_v17 = vld [vmem:[#allocation2 + $0x30] sm:$0xff]  }
  0x34   :  { %916 = vmatmul.mubr.msk.bf16.gmra.mrb[12].mxu0 %vm121_vm0, %v998_v15  ;;  %963 = vmatprep.subr.bf16.mxu0 %v1013_v17 }
  0x35   :  { %964 = vmatpush3.bf16.msra.mxu0 %v1013_v17 }
  0x36   :  { %965 = vmatprep.subr.bf16.mxu0 %v1014_v18 }
  0x39   :  { %966 = vmatpush3.bf16.msra.mxu0 %v1014_v18 }
  0xef   :  { %v905_v25 = vpop.f32.mrb[0].mxu0 }
  0xf0   :  { %v189_v26 = vadd.f32 %v905_v25, %v820_v24  ;;  %v180_v27 = vpop.f32.mrb[1].mxu0 }
  0xf1   :  { %v181_v28 = vadd.f32 %v820_v24, %v180_v27  ;;  %v906_v29 = vpop.f32.mrb[2].mxu0 }
  0xf2   :  { %v192_v30 = vadd.f32 %v906_v29, %v820_v24  ;;  %v183_v31 = vpop.f32.mrb[3].mxu0  ;;  %v245_v33 = vmax.f32 %v189_v26, 0.0 }
  0xf3   :  { %v184_v32 = vadd.f32 %v820_v24, %v183_v31  ;;  %v243_v35 = vmax.f32 %v181_v28, 0.0 }
  0xf4   :  { %v246_v34 = vmax.f32 %v192_v30, 0.0 }
  0xf5   :  { %v244_v36 = vmax.f32 %v184_v32, 0.0 }
  0xf6   :  { %v260_v37 = vpack.c.bf16 %v246_v34, %v245_v33 }
  0xf7   :  { %v909_v38 = vpop.f32.mrb[4].mxu0  ;;  %v259_v39 = vpack.c.bf16 %v244_v36, %v243_v35 }
  0xf8   :  { %v205_v40 = vadd.f32 %v909_v38, %v820_v24  ;;  %v196_v41 = vpop.f32.mrb[5].mxu0 }
  0xf9   :  { %v197_v42 = vadd.f32 %v820_v24, %v196_v41  ;;  %v910_v43 = vpop.f32.mrb[6].mxu0  ;;  %935 = vmatprep.mubr.bf16.mxu1 %v259_v39 }
  0xfa   :  { %v249_v44 = vmax.f32 %v205_v40, 0.0  ;;  %v208_v45 = vadd.f32 %v910_v43, %v820_v24  ;;  %v199_v46 = vpop.f32.mrb[7].mxu0  ;;  %936 = vmatmul.mubr.bf16.vlgmr.msra.gmra.mrb[0].mxu1 %v260_v37 }
  0xfb   :  { %v200_v47 = vadd.f32 %v820_v24, %v199_v46  ;;  %v247_v49 = vmax.f32 %v197_v42, 0.0 }
  0xfc   :  { %v250_v48 = vmax.f32 %v208_v45, 0.0 }
  0xfd   :  { %v248_v50 = vmax.f32 %v200_v47, 0.0 }
  0xfe   :  { %v262_v51 = vpack.c.bf16 %v250_v48, %v249_v44 }
  0xff   :  { %v261_v52 = vpack.c.bf16 %v248_v50, %v247_v49  ;;  %v913_v53 = vpop.f32.mrb[8].mxu0 }
 0x100   :  { %v221_v54 = vadd.f32 %v913_v53, %v820_v24  ;;  %v212_v55 = vpop.f32.mrb[9].mxu0 }
 0x101   :  { %v213_v56 = vadd.f32 %v820_v24, %v212_v55  ;;  %v914_v57 = vpop.f32.mrb[10].mxu0  ;;  %939 = vmatprep.mubr.bf16.mxu1 %v261_v52 }
 0x102   :  { %v253_v58 = vmax.f32 %v221_v54, 0.0  ;;  %v224_v59 = vadd.f32 %v914_v57, %v820_v24  ;;  %v215_v60 = vpop.f32.mrb[11].mxu0  ;;  %940 = vmatmul.mubr.bf16.gmra.mrb[4].mxu1 %v262_v51 }
 0x103   :  { %v216_v61 = vadd.f32 %v820_v24, %v215_v60  ;;  %v251_v63 = vmax.f32 %v213_v56, 0.0 }
 0x104   :  { %v254_v62 = vmax.f32 %v224_v59, 0.0 }
 0x105   :  { %v252_v0 = vmax.f32 %v216_v61, 0.0 }
 0x106   :  { %v264_v1 = vpack.c.bf16 %v254_v62, %v253_v58 }
 0x107   :  { %v263_v2 = vpack.c.bf16 %v252_v0, %v251_v63  ;;  %v917_v3 = vpop.f32.mrb[12].mxu0 }
 0x108   :  { %v237_v4 = vadd.f32 %v917_v3, %v820_v24  ;;  %v228_v5 = vpop.f32.mrb[13].mxu0 }
 0x109   :  { %v229_v6 = vadd.f32 %v820_v24, %v228_v5  ;;  %v918_v7 = vpop.f32.mrb[14].mxu0  ;;  %943 = vmatprep.mubr.bf16.mxu1 %v263_v2 }
 0x10a   :  { %v257_v8 = vmax.f32 %v237_v4, 0.0  ;;  %v240_v9 = vadd.f32 %v918_v7, %v820_v24  ;;  %v231_v10 = vpop.f32.mrb[15].mxu0  ;;  %944 = vmatmul.mubr.bf16.gmra.mrb[8].mxu1 %v264_v1 }
 0x10b   :  { %v232_v11 = vadd.f32 %v820_v24, %v231_v10  ;;  %v255_v13 = vmax.f32 %v229_v6, 0.0 }
 0x10c   :  { %v258_v12 = vmax.f32 %v240_v9, 0.0 }
 0x10d   :  { %v256_v14 = vmax.f32 %v232_v11, 0.0 }
 0x10e   :  { %v266_v15 = vpack.c.bf16 %v258_v12, %v257_v8  ;;  %v848_v12 = vld [vmem:[%s1358_s6] ss:$0 sm:$0xff]  ;;  %s1130_s6 = smov [#allocation5]  }
 0x10f   :  { %v265_v16 = vpack.c.bf16 %v256_v14, %v255_v13  ;;  %s808_s26 = sshll.u32 %s1130_s6, 4  ;;  %s809_s26 = int_to_ptr.vmem [resolvable:$true] %s808_s26 }
 0x110   :  { %s1101_s27 = scalar_lea.vmem %s809_s26, 2048  ;;  %p1106_p9 = scmp.lt.s32.totalorder %s809_s26, %s809_s26 }
 0x111   :  { %947 = vmatprep.mubr.bf16.mxu1 %v265_v16  ;;  %p1102_p8 = scmp.ne.s32.totalorder %s809_s26, %s1101_s27  ;;  %p1107_p10 = scmp.lt.s32.totalorder %s1101_s27, %s1101_s27 }
 0x112   :  { %948 = vmatmul.mubr.bf16.gmra.mrb[12].mxu1 %v266_v15 }
 0x113   :  { %p1108_p11 = por %p1107_p10, %p1106_p9 }
 0x115   :  { %p1109_p12 = pnand %p1108_p11, %p1102_p8 }
 0x1cd   :  { %v937_v20 = vpop.f32.mrb[0].mxu1 }
 0x1ce   :  { %v381_v21 = vadd.f32 %v937_v20, %v839_v19  ;;  %v372_v22 = vpop.f32.mrb[1].mxu1 }
 0x1cf   :  { %v373_v23 = vadd.f32 %v839_v19, %v372_v22  ;;  %v938_v24 = vpop.f32.mrb[2].mxu1 }
 0x1d0   :  { %v384_v25 = vadd.f32 %v938_v24, %v839_v19  ;;  %v375_v26 = vpop.f32.mrb[3].mxu1  ;;  %v437_v28 = vmax.f32 %v381_v21, 0.0 }
 0x1d1   :  { %v376_v27 = vadd.f32 %v839_v19, %v375_v26  ;;  %v435_v30 = vmax.f32 %v373_v23, 0.0 }
 0x1d2   :  { %v438_v29 = vmax.f32 %v384_v25, 0.0 }
 0x1d3   :  { %v436_v31 = vmax.f32 %v376_v27, 0.0 }
 0x1d4   :  { %v452_v32 = vpack.c.bf16 %v438_v29, %v437_v28 }
 0x1d5   :  { %v451_v33 = vpack.c.bf16 %v436_v31, %v435_v30  ;;  %v941_v34 = vpop.f32.mrb[4].mxu1 }
 0x1d6   :  { %v397_v35 = vadd.f32 %v941_v34, %v839_v19  ;;  %v388_v36 = vpop.f32.mrb[5].mxu1 }
 0x1d7   :  { %v389_v37 = vadd.f32 %v839_v19, %v388_v36  ;;  %v942_v38 = vpop.f32.mrb[6].mxu1  ;;  %967 = vmatprep.mubr.bf16.mxu0 %v451_v33 }
 0x1d8   :  { %v400_v39 = vadd.f32 %v942_v38, %v839_v19  ;;  %v391_v40 = vpop.f32.mrb[7].mxu1  ;;  %968 = vmatmul.mubr.bf16.vlgmr.msra.gmra.mrb[16].mxu0 %v452_v32  ;;  %v441_v42 = vmax.f32 %v397_v35, 0.0 }
 0x1d9   :  { %v392_v41 = vadd.f32 %v839_v19, %v391_v40  ;;  %v439_v44 = vmax.f32 %v389_v37, 0.0 }
 0x1da   :  { %v442_v43 = vmax.f32 %v400_v39, 0.0 }
 0x1db   :  { %v440_v45 = vmax.f32 %v392_v41, 0.0 }
 0x1dc   :  { %v454_v46 = vpack.c.bf16 %v442_v43, %v441_v42 }
 0x1dd   :  { %v453_v47 = vpack.c.bf16 %v440_v45, %v439_v44  ;;  %v945_v48 = vpop.f32.mrb[8].mxu1 }
 0x1de   :  { %v413_v49 = vadd.f32 %v945_v48, %v839_v19  ;;  %v404_v50 = vpop.f32.mrb[9].mxu1 }
 0x1df   :  { %v405_v51 = vadd.f32 %v839_v19, %v404_v50  ;;  %v946_v52 = vpop.f32.mrb[10].mxu1  ;;  %971 = vmatprep.mubr.bf16.mxu0 %v453_v47 }
 0x1e0   :  { %v416_v53 = vadd.f32 %v946_v52, %v839_v19  ;;  %v407_v54 = vpop.f32.mrb[11].mxu1  ;;  %972 = vmatmul.mubr.bf16.gmra.mrb[20].mxu0 %v454_v46  ;;  %v445_v56 = vmax.f32 %v413_v49, 0.0 }
 0x1e1   :  { %v408_v55 = vadd.f32 %v839_v19, %v407_v54  ;;  %v443_v58 = vmax.f32 %v405_v51, 0.0 }
 0x1e2   :  { %v446_v57 = vmax.f32 %v416_v53, 0.0 }
 0x1e3   :  { %v444_v59 = vmax.f32 %v408_v55, 0.0 }
 0x1e4   :  { %v456_v60 = vpack.c.bf16 %v446_v57, %v445_v56 }
 0x1e5   :  { %v455_v61 = vpack.c.bf16 %v444_v59, %v443_v58  ;;  %v949_v62 = vpop.f32.mrb[12].mxu1 }
 0x1e6   :  { %v429_v63 = vadd.f32 %v949_v62, %v839_v19  ;;  %v420_v0 = vpop.f32.mrb[13].mxu1 }
 0x1e7   :  { %v421_v1 = vadd.f32 %v839_v19, %v420_v0  ;;  %v950_v2 = vpop.f32.mrb[14].mxu1  ;;  %975 = vmatprep.mubr.bf16.mxu0 %v455_v61 }
 0x1e8   :  { %v432_v3 = vadd.f32 %v950_v2, %v839_v19  ;;  %v423_v4 = vpop.f32.mrb[15].mxu1  ;;  %976 = vmatmul.mubr.bf16.gmra.mrb[24].mxu0 %v456_v60  ;;  %v449_v6 = vmax.f32 %v429_v63, 0.0 }
 0x1e9   :  { %v424_v5 = vadd.f32 %v839_v19, %v423_v4  ;;  %v447_v8 = vmax.f32 %v421_v1, 0.0 }
 0x1ea   :  { %v450_v7 = vmax.f32 %v432_v3, 0.0 }
 0x1eb   :  { %v448_v9 = vmax.f32 %v424_v5, 0.0 }
 0x1ec   :  { %v458_v10 = vpack.c.bf16 %v450_v7, %v449_v6 }
 0x1ed   :  { %v457_v11 = vpack.c.bf16 %v448_v9, %v447_v8 }
 0x1ef   :  { %979 = vmatprep.mubr.bf16.mxu0 %v457_v11 }
 0x1f0   :  { %980 = vmatmul.mubr.bf16.gmra.mrb[28].mxu0 %v458_v10 }
 0x2ab   :  { %v969_v13 = vpop.f32.mrb[16].mxu0 }
 0x2ac   :  { %v573_v14 = vadd.f32 %v969_v13, %v848_v12  ;;  %v564_v15 = vpop.f32.mrb[17].mxu0 }
 0x2ad   :  { %v565_v16 = vadd.f32 %v848_v12, %v564_v15  ;;  %v970_v17 = vpop.f32.mrb[18].mxu0 }
 0x2ae   :  { %631 = vmax.xlane.f32.xlu1 %v573_v14  ;;  %v567_v18 = vpop.f32.mrb[19].mxu0  ;;  %v576_v19 = vadd.f32 %v970_v17, %v848_v12 }
 0x2af   :  { %627 = vmax.xlane.f32.xlu0 %v565_v16  ;;  %v568_v20 = vadd.f32 %v848_v12, %v567_v18 }
 0x2b2   :  { %633 = vmax.xlane.f32.xlu1 %v576_v19 }
 0x2b3   :  { %v973_v21 = vpop.f32.mrb[20].mxu0  ;;  %629 = vmax.xlane.f32.xlu0 %v568_v20 }
 0x2b4   :  { %v589_v22 = vadd.f32 %v973_v21, %v848_v12  ;;  %v580_v23 = vpop.f32.mrb[21].mxu0 }
 0x2b5   :  { %v974_v24 = vpop.f32.mrb[22].mxu0  ;;  %v581_v27 = vadd.f32 %v848_v12, %v580_v23 }
 0x2b6   :  { %v592_v25 = vadd.f32 %v974_v24, %v848_v12  ;;  %v583_v26 = vpop.f32.mrb[23].mxu0 }
 0x2b7   :  { %639 = vmax.xlane.f32.xlu0 %v589_v22  ;;  %v584_v28 = vadd.f32 %v848_v12, %v583_v26 }
 0x2b8   :  { %641 = vmax.xlane.f32.xlu1 %v592_v25 }
 0x2bb   :  { %v977_v29 = vpop.f32.mrb[24].mxu0  ;;  %635 = vmax.xlane.f32.xlu0 %v581_v27 }
 0x2bc   :  { %v605_v30 = vadd.f32 %v977_v29, %v848_v12  ;;  %v596_v31 = vpop.f32.mrb[25].mxu0  ;;  %637 = vmax.xlane.f32.xlu1 %v584_v28 }
 0x2bd   :  { %v978_v32 = vpop.f32.mrb[26].mxu0  ;;  %v597_v35 = vadd.f32 %v848_v12, %v596_v31 }
 0x2be   :  { %v608_v33 = vadd.f32 %v978_v32, %v848_v12  ;;  %v599_v34 = vpop.f32.mrb[27].mxu0 }
 0x2bf   :  { %647 = vmax.xlane.f32.xlu0 %v605_v30  ;;  %v1256_v36 = vadd.f32 %v848_v12, %v599_v34 }
 0x2c0   :  { %649 = vmax.xlane.f32.xlu1 %v608_v33 }
 0x2c3   :  { %v981_v37 = vpop.f32.mrb[28].mxu0  ;;  %643 = vmax.xlane.f32.xlu0 %v597_v35 }
 0x2c4   :  { %v612_v38 = vpop.f32.mrb[29].mxu0  ;;  %645 = vmax.xlane.f32.xlu1 %v1256_v36  ;;  %v1264_v43 = vadd.f32 %v981_v37, %v848_v12 }
 0x2c5   :  { %v1259_v39 = vadd.f32 %v848_v12, %v612_v38  ;;  %v982_v40 = vpop.f32.mrb[30].mxu0 }
 0x2c6   :  { %v615_v41 = vpop.f32.mrb[31].mxu0  ;;  %v1267_v44 = vadd.f32 %v982_v40, %v848_v12 }
 0x2c7   :  { %v1261_v42 = vadd.f32 %v848_v12, %v615_v41  ;;  %651 = vmax.xlane.f32.xlu0 %v1259_v39 }
 0x2c9   :  { %653 = vmax.xlane.f32.xlu1 %v1261_v42 }
 0x2cb   :  { %655 = vmax.xlane.f32.xlu0 %v1264_v43 }
 0x2cd   :  { %657 = vmax.xlane.f32.xlu1 %v1267_v44 }
 0x33b   :  { %v632_v45 = vpop.xlane.xlu1 %631 }
 0x33c   :  { %v1271_v46 = vsub.f32 %v573_v14, %v632_v45  ;;  %v628_v47 = vpop.xlane.xlu0 %627 }
 0x33d   :  { %v1273_v48 = vsub.f32 %v565_v16, %v628_v47 }
 0x33e   :  { %v679_v49 = vmul.f32 1.442695, %v1271_v46 }
 0x33f   :  { %v675_v50 = vmul.f32 1.442695, %v1273_v48  ;;  %v634_v51 = vpop.xlane.xlu1 %633 }
 0x340   :  { %1015 = vpow2.f32 %v679_v49  ;;  %v1277_v52 = vsub.f32 %v576_v19, %v634_v51  ;;  %v630_v53 = vpop.xlane.xlu0 %629 }
 0x341   :  { %v1279_v54 = vsub.f32 %v568_v20, %v630_v53  ;;  %1017 = vpow2.f32 %v675_v50 }
 0x342   :  { %v681_v55 = vmul.f32 1.442695, %v1277_v52 }
 0x343   :  { %v677_v56 = vmul.f32 1.442695, %v1279_v54 }
 0x344   :  { %1019 = vpow2.f32 %v681_v55  ;;  %v640_v57 = vpop.xlane.xlu0 %639 }
 0x345   :  { %v1283_v58 = vsub.f32 %v589_v22, %v640_v57  ;;  %v642_v59 = vpop.xlane.xlu1 %641  ;;  %1021 = vpow2.f32 %v677_v56 }
 0x346   :  { %v1285_v60 = vsub.f32 %v592_v25, %v642_v59 }
 0x347   :  { %v687_v61 = vmul.f32 1.442695, %v1283_v58 }
 0x348   :  { %v689_v62 = vmul.f32 1.442695, %v1285_v60  ;;  %v636_v63 = vpop.xlane.xlu0 %635 }
 0x349   :  { %1023 = vpow2.f32 %v687_v61  ;;  %v1289_v0 = vsub.f32 %v581_v27, %v636_v63  ;;  %v638_v1 = vpop.xlane.xlu1 %637 }
 0x34a   :  { %v1016_v2 = vpop.eup %1015  ;;  %v1291_v3 = vsub.f32 %v584_v28, %v638_v1  ;;  %1025 = vpow2.f32 %v689_v62 }
 0x34b   :  { %v683_v4 = vmul.f32 1.442695, %v1289_v0  ;;  %711 = vadd.xlane.f32.xlu0 %v1016_v2  ;;  %v1018_v7 = vpop.eup %1017 }
 0x34c   :  { %v685_v5 = vmul.f32 1.442695, %v1291_v3  ;;  %v648_v6 = vpop.xlane.xlu0 %647 }
 0x34d   :  { %1027 = vpow2.f32 %v683_v4  ;;  %v1295_v8 = vsub.f32 %v605_v30, %v648_v6  ;;  %v650_v9 = vpop.xlane.xlu1 %649 }
 0x34e   :  { %v1020_v10 = vpop.eup %1019  ;;  %v1297_v11 = vsub.f32 %v608_v33, %v650_v9  ;;  %1029 = vpow2.f32 %v685_v5 }
 0x34f   :  { %v695_v12 = vmul.f32 1.442695, %v1295_v8  ;;  %713 = vadd.xlane.f32.xlu1 %v1020_v10  ;;  %707 = vadd.xlane.f32.xlu0 %v1018_v7  ;;  %v1022_v17 = vpop.eup %1021 }
 0x350   :  { %v697_v13 = vmul.f32 1.442695, %v1297_v11  ;;  %v644_v14 = vpop.xlane.xlu0 %643 }
 0x351   :  { %1031 = vpow2.f32 %v695_v12  ;;  %v1301_v15 = vsub.f32 %v597_v35, %v644_v14  ;;  %v646_v16 = vpop.xlane.xlu1 %645 }
 0x352   :  { %v1304_v18 = vsub.f32 %v1256_v36, %v646_v16  ;;  %1033 = vpow2.f32 %v697_v13 }
 0x353   :  { %v1024_v19 = vpop.eup %1023  ;;  %v691_v20 = vmul.f32 1.442695, %v1301_v15  ;;  %709 = vadd.xlane.f32.xlu1 %v1022_v17 }
 0x354   :  { %v693_v21 = vmul.f32 1.442695, %v1304_v18  ;;  %719 = vadd.xlane.f32.xlu0 %v1024_v19  ;;  %v652_v22 = vpop.xlane.xlu0 %651  ;;  %v1026_v24 = vpop.eup %1025 }
 0x355   :  { %1035 = vpow2.f32 %v691_v20  ;;  %v1309_v23 = vsub.f32 %v1259_v39, %v652_v22 }
 0x356   :  { %v654_v25 = vpop.xlane.xlu1 %653  ;;  %1037 = vpow2.f32 %v693_v21 }
 0x357   :  { %v1028_v26 = vpop.eup %1027  ;;  %v699_v27 = vmul.f32 1.442695, %v1309_v23  ;;  %v1313_v28 = vsub.f32 %v1261_v42, %v654_v25  ;;  %721 = vadd.xlane.f32.xlu1 %v1026_v24 }
 0x358   :  { %715 = vadd.xlane.f32.xlu0 %v1028_v26  ;;  %v656_v29 = vpop.xlane.xlu0 %655  ;;  %v1030_v32 = vpop.eup %1029 }
 0x359   :  { %1039 = vpow2.f32 %v699_v27  ;;  %v701_v30 = vmul.f32 1.442695, %v1313_v28  ;;  %v1317_v31 = vsub.f32 %v1264_v43, %v656_v29 }
 0x35a   :  { %v658_v33 = vpop.xlane.xlu1 %657 }
 0x35b   :  { %v1032_v34 = vpop.eup %1031  ;;  %1041 = vpow2.f32 %v701_v30  ;;  %v703_v35 = vmul.f32 1.442695, %v1317_v31  ;;  %v1321_v36 = vsub.f32 %v1267_v44, %v658_v33  ;;  %717 = vadd.xlane.f32.xlu1 %v1030_v32 }
 0x35c   :  { %727 = vadd.xlane.f32.xlu0 %v1032_v34  ;;  %v1034_v38 = vpop.eup %1033 }
 0x35d   :  { %1043 = vpow2.f32 %v703_v35  ;;  %v705_v37 = vmul.f32 1.442695, %v1321_v36 }
 0x35f   :  { %v1036_v39 = vpop.eup %1035  ;;  %1045 = vpow2.f32 %v705_v37  ;;  %729 = vadd.xlane.f32.xlu1 %v1034_v38 }
 0x360   :  { %723 = vadd.xlane.f32.xlu0 %v1036_v39  ;;  %v1038_v40 = vpop.eup %1037 }
 0x363   :  { %v1040_v41 = vpop.eup %1039  ;;  %725 = vadd.xlane.f32.xlu1 %v1038_v40 }
 0x364   :  { %731 = vadd.xlane.f32.xlu0 %v1040_v41 }
 0x365   :  { %v1042_v42 = vpop.eup %1041 }
 0x367   :  { %v1044_v43 = vpop.eup %1043  ;;  %733 = vadd.xlane.f32.xlu1 %v1042_v42 }
 0x368   :  { %735 = vadd.xlane.f32.xlu0 %v1044_v43 }
 0x369   :  { %v1046_v44 = vpop.eup %1045 }
 0x36b   :  { %737 = vadd.xlane.f32.xlu1 %v1046_v44 }
 0x3d8   :  { %v712_v45 = vpop.xlane.xlu0 %711 }
 0x3d9   :  { %1047 = vlog2.f32 %v712_v45 }
 0x3dc   :  { %v714_v47 = vpop.xlane.xlu1 %713  ;;  %v708_v49 = vpop.xlane.xlu0 %707 }
 0x3dd   :  { %1049 = vlog2.f32 %v714_v47 }
 0x3de   :  { %1051 = vlog2.f32 %v708_v49 }
 0x3e0   :  { %v710_v50 = vpop.xlane.xlu1 %709 }
 0x3e1   :  { %1053 = vlog2.f32 %v710_v50  ;;  %v720_v51 = vpop.xlane.xlu0 %719 }
 0x3e2   :  { %1055 = vlog2.f32 %v720_v51 }
 0x3e3   :  { %v1048_v53 = vpop.eup %1047 }
 0x3e4   :  { %v744_v55 = vmul.f32 0.6931472, %v1048_v53  ;;  %v722_v56 = vpop.xlane.xlu1 %721 }
 0x3e5   :  { %1057 = vlog2.f32 %v722_v56  ;;  %v716_v57 = vpop.xlane.xlu0 %715 }
 0x3e6   :  { %v773_v59 = vsub.f32 %v1271_v46, %v744_v55  ;;  %1059 = vlog2.f32 %v716_v57 }
 0x3e7   :  { %v1050_v61 = vpop.eup %1049 }
 0x3e8   :  { %v1052_v62 = vpop.eup %1051  ;;  %789 = vst [vmem:[#allocation5 + $0x10] sm:$0xff] %v773_v59  ;;  %v746_v63 = vmul.f32 0.6931472, %v1050_v61  ;;  %v718_v1 = vpop.xlane.xlu1 %717 }
 0x3e9   :  { %v740_v2 = vmul.f32 0.6931472, %v1052_v62  ;;  %1061 = vlog2.f32 %v718_v1  ;;  %v728_v4 = vpop.xlane.xlu0 %727 }
 0x3ea   :  { %v774_v5 = vsub.f32 %v1277_v52, %v746_v63  ;;  %1063 = vlog2.f32 %v728_v4 }
 0x3eb   :  { %v1054_v6 = vpop.eup %1053  ;;  %v771_v7 = vsub.f32 %v1273_v48, %v740_v2 }
 0x3ec   :  { %v1056_v9 = vpop.eup %1055  ;;  %790 = vst [vmem:[#allocation5 + $0x18] sm:$0xff] %v774_v5  ;;  %v742_v10 = vmul.f32 0.6931472, %v1054_v6  ;;  %v730_v12 = vpop.xlane.xlu1 %729 }
 0x3ed   :  { %787 = vst [vmem:[#allocation5] sm:$0xff] %v771_v7  ;;  %v752_v46 = vmul.f32 0.6931472, %v1056_v9  ;;  %1065 = vlog2.f32 %v730_v12  ;;  %v724_v13 = vpop.xlane.xlu0 %723 }
 0x3ee   :  { %v772_v14 = vsub.f32 %v1279_v54, %v742_v10  ;;  %1067 = vlog2.f32 %v724_v13 }
 0x3ef   :  { %v1058_v16 = vpop.eup %1057  ;;  %v777_v17 = vsub.f32 %v1283_v58, %v752_v46 }
 0x3f0   :  { %v1060_v19 = vpop.eup %1059  ;;  %788 = vst [vmem:[#allocation5 + $0x8] sm:$0xff] %v772_v14  ;;  %v754_v52 = vmul.f32 0.6931472, %v1058_v16  ;;  %v726_v20 = vpop.xlane.xlu1 %725 }
 0x3f1   :  { %793 = vst [vmem:[#allocation5 + $0x30] sm:$0xff] %v777_v17  ;;  %v748_v48 = vmul.f32 0.6931472, %v1060_v19  ;;  %1069 = vlog2.f32 %v726_v20  ;;  %v732_v21 = vpop.xlane.xlu0 %731 }
 0x3f2   :  { %v778_v22 = vsub.f32 %v1285_v60, %v754_v52  ;;  %1071 = vlog2.f32 %v732_v21 }
 0x3f3   :  { %v1062_v24 = vpop.eup %1061  ;;  %v775_v25 = vsub.f32 %v1289_v0, %v748_v48 }
 0x3f4   :  { %v1064_v26 = vpop.eup %1063  ;;  %794 = vst [vmem:[#allocation5 + $0x38] sm:$0xff] %v778_v22  ;;  %v750_v54 = vmul.f32 0.6931472, %v1062_v24  ;;  %v734_v27 = vpop.xlane.xlu1 %733 }
 0x3f5   :  { %791 = vst [vmem:[#allocation5 + $0x20] sm:$0xff] %v775_v25  ;;  %v760_v58 = vmul.f32 0.6931472, %v1064_v26  ;;  %1073 = vlog2.f32 %v734_v27  ;;  %v736_v29 = vpop.xlane.xlu0 %735 }
 0x3f6   :  { %v776_v30 = vsub.f32 %v1291_v3, %v750_v54  ;;  %1075 = vlog2.f32 %v736_v29 }
 0x3f7   :  { %v1066_v32 = vpop.eup %1065  ;;  %v781_v33 = vsub.f32 %v1295_v8, %v760_v58 }
 0x3f8   :  { %v1068_v34 = vpop.eup %1067  ;;  %792 = vst [vmem:[#allocation5 + $0x28] sm:$0xff] %v776_v30  ;;  %v762_v60 = vmul.f32 0.6931472, %v1066_v32  ;;  %v738_v35 = vpop.xlane.xlu1 %737 }
 0x3f9   :  { %797 = vst [vmem:[#allocation5 + $0x50] sm:$0xff] %v781_v33  ;;  %v756_v0 = vmul.f32 0.6931472, %v1068_v34  ;;  %1077 = vlog2.f32 %v738_v35 }
 0x3fa   :  { %v782_v37 = vsub.f32 %v1297_v11, %v762_v60 }
 0x3fb   :  { %v1070_v38 = vpop.eup %1069  ;;  %v779_v39 = vsub.f32 %v1301_v15, %v756_v0 }
 0x3fc   :  { %v1072_v40 = vpop.eup %1071  ;;  %798 = vst [vmem:[#allocation5 + $0x58] sm:$0xff] %v782_v37  ;;  %v758_v41 = vmul.f32 0.6931472, %v1070_v38 }
 0x3fd   :  { %795 = vst [vmem:[#allocation5 + $0x40] sm:$0xff] %v779_v39  ;;  %v764_v3 = vmul.f32 0.6931472, %v1072_v40 }
 0x3fe   :  { %v780_v42 = vsub.f32 %v1304_v18, %v758_v41 }
 0x3ff   :  { %v1074_v8 = vpop.eup %1073  ;;  %v783_v43 = vsub.f32 %v1309_v23, %v764_v3 }
 0x400   :  { %v1076_v44 = vpop.eup %1075  ;;  %796 = vst [vmem:[#allocation5 + $0x48] sm:$0xff] %v780_v42  ;;  %v766_v45 = vmul.f32 0.6931472, %v1074_v8 }
 0x401   :  { %799 = vst [vmem:[#allocation5 + $0x60] sm:$0xff] %v783_v43  ;;  %v768_v47 = vmul.f32 0.6931472, %v1076_v44 }
 0x402   :  { %v784_v11 = vsub.f32 %v1313_v28, %v766_v45 }
 0x403   :  { %v1078_v49 = vpop.eup %1077  ;;  %v785_v15 = vsub.f32 %v1317_v31, %v768_v47 }
 0x404   :  { %800 = vst [vmem:[#allocation5 + $0x68] sm:$0xff] %v784_v11  ;;  %v770_v50 = vmul.f32 0.6931472, %v1078_v49 }
 0x405   :  { %801 = vst [vmem:[#allocation5 + $0x70] sm:$0xff] %v785_v15 }
 0x406   :  { %v786_v18 = vsub.f32 %v1321_v36, %v770_v50 }
 0x408   :  { %802 = vst [vmem:[#allocation5 + $0x78] sm:$0xff] %v786_v18 }
 0x409   :  { %1112 = shalt.err (!%p1109_p12)
}
 0x40a   :  { %s1113_s30 = scalar_lea.hbm %s1359_s7, 2048 }
 0x40b   :  { %p1114_p13 = scmp.ne.s32.totalorder %s1359_s7, %s1113_s30  ;;  %p1117_p0 = scmp.lt.u32.totalorder %s1113_s30, %s1359_s7 }
 0x40d   :  { %p1119_p1 = pnand %p1117_p0, %p1114_p13 }
 0x40f   :  { %1122 = shalt.err (!%p1119_p1)
}
 0x410   :  { %s1131_s12 = smov 128   ;;  %s1132_s13 = smov 8  }
 0x411   :  { %814 = dma.vmem_to_hbm [thread:$0]  %s809_s26, 2048, %s1359_s7, [#allocation4], %s1131_s12, %s1131_s12, %s1132_s13  }
 0x412   :  { %1125 = dma.done.wait [#allocation4], 2048  }
 0x413   :  { %1126 = vsyncadd [#allocation4], 4294965248 }
 0x414   :  { %818 = vsyncpa [#allocation3], 1 }
 0x415   :  { %819 = vsyncpa [#allocation4], 1 }

</bundles_post_ra>
